<compile_context>
chip_gen: v5e
topology: v5e:2x2
jax: 0.10.0
libtpu: 0.0.40
codegen_flags: <defaults>
</compile_context>

<pallas_src>
import functools

import jax
import jax.numpy as jnp
from jax.experimental import pallas as pl
from jax.experimental.pallas import tpu as pltpu


def _round_up(x, m):
    return ((x + m - 1) // m) * m


def _cdiv(a, b):
    return (a + b - 1) // b


def _choose_tile(batch, seq, requested):
    """Pick the per-grid-step token-row tile (multiple of 8)."""
    if requested is not None:
        ts = requested
    elif seq >= 1024:
        ts = 512
    elif seq >= 256:
        ts = 256
    else:
        ts = 128
    ts = _round_up(min(ts, _round_up(seq, 8)), 8)
    # For batch == 1, keep >= 2 sequence tiles so a v7x megacore can split the
    # grid across both TensorCores (no effect on single-TC v5e/v6e).
    if batch == 1:
        while ts > 8 and _cdiv(seq, ts) < 2:
            ts = _round_up(ts // 2, 8)
    return ts


def _choose_chunks(ts):
    """Number of row chunks per tile (each chunk a multiple of 8 rows)."""
    sub = ts // 8
    for d in (4, 3, 2):
        if sub % d == 0:
            return d
    return 1


def _bert_embeddings_kernel(ids_ref, word_tab_hbm, pos_ref, gamma_ref, beta_ref,
                            o_ref, gather_buf, sems, *,
                            eps, ts, cs, n_chunks, n_seq_tiles):
    # ids_ref:      (B * S_pad,) int32 in SMEM (scalar-prefetched token ids)
    # word_tab_hbm: (V, H) embedding table left in HBM (pl.ANY) -- DMA-gathered
    # pos_ref:      (ts, H) position-embedding tile (dense BlockSpec slice)
    # gamma_ref:    (1, H)  f32 LayerNorm weight
    # beta_ref:     (1, H)  f32 LayerNorm bias
    # o_ref:        (ts, H) output tile
    # gather_buf:   (ts, H) VMEM scratch holding the gathered word rows
    # sems:         (n_chunks,) DMA semaphores, one per row chunk
    b = pl.program_id(0)                 # batch index
    j = pl.program_id(1)                 # sequence-tile index
    base = (b * n_seq_tiles + j) * ts    # first flattened token of this tile

    def issue_chunk(c):
        # One async row copy per token of chunk c (DMA gather); all rows of a
        # chunk signal the same semaphore.
        for t in range(cs):
            row = c * cs + t
            tok = ids_ref[base + row]
            pltpu.make_async_copy(
                word_tab_hbm.at[pl.ds(tok, 1), :],   # (1, H) row in HBM
                gather_buf.at[pl.ds(row, 1), :],     # (1, H) row in VMEM
                sems.at[c],
            ).start()

    def wait_chunk(c):
        # DMA semaphores count bytes: a single wait whose descriptor covers
        # the whole (cs, H) chunk consumes all cs row-copy completions at
        # once (only the dst shape matters for the wait amount).
        pltpu.make_async_copy(
            gather_buf.at[pl.ds(c * cs, cs), :],
            gather_buf.at[pl.ds(c * cs, cs), :],
            sems.at[c],
        ).wait()

    gamma = gamma_ref[...].astype(jnp.float32)
    beta = beta_ref[...].astype(jnp.float32)

    # Prime the pipeline with chunk 0, then: issue chunk c+1, wait chunk c,
    # LayerNorm chunk c while chunk c+1's DMAs are in flight.
    issue_chunk(0)
    for c in range(n_chunks):
        if c + 1 < n_chunks:
            issue_chunk(c + 1)
        wait_chunk(c)

        rows = pl.ds(c * cs, cs)
        emb = (gather_buf[rows, :].astype(jnp.float32)
               + pos_ref[rows, :].astype(jnp.float32))
        mean = jnp.mean(emb, axis=-1, keepdims=True)
        var = jnp.mean(jnp.square(emb - mean), axis=-1, keepdims=True)
        normed = (emb - mean) * jax.lax.rsqrt(var + eps)
        o_ref[rows, :] = (normed * gamma + beta).astype(o_ref.dtype)


def bert_embeddings(input_ids, word_table, pos_table, gamma, beta, *,
                    eps=1e-12, past_key_values_length=0, ts=None):
    """BertEmbeddings forward (absolute position embeddings, inference).

    input_ids:  [B, S] int token ids
    word_table: [V, H] word-embedding table
    pos_table:  [P, H] position-embedding table
    gamma/beta: [H]    LayerNorm affine parameters
    returns     [B, S, H]
    """
    B, S = input_ids.shape
    V, H = word_table.shape

    ts = _choose_tile(B, S, ts)
    n_chunks = _choose_chunks(ts)
    cs = ts // n_chunks
    n_seq_tiles = _cdiv(S, ts)
    s_pad = n_seq_tiles * ts

    ids = input_ids.astype(jnp.int32)
    if s_pad != S:
        # pad with id 0; padded rows are gathered/normalized but sliced off
        # below (wasted work only on the last sequence tile).
        ids = jnp.pad(ids, ((0, 0), (0, s_pad - S)))
    ids_flat = ids.reshape(B * s_pad)

    # Absolute position embeddings for this window (a static slice, no
    # compute), zero-padded to the tile boundary.
    pos_slice = jax.lax.dynamic_slice_in_dim(
        pos_table, past_key_values_length, S, axis=0)
    if s_pad != S:
        pos_slice = jnp.pad(pos_slice, ((0, s_pad - S), (0, 0)))

    # Keep LN affine params in f32 (do NOT quantize to the table dtype).
    gamma2 = gamma.reshape(1, H).astype(jnp.float32)
    beta2 = beta.reshape(1, H).astype(jnp.float32)

    kernel = functools.partial(
        _bert_embeddings_kernel,
        eps=eps, ts=ts, cs=cs, n_chunks=n_chunks, n_seq_tiles=n_seq_tiles)

    itemsize = jnp.dtype(word_table.dtype).itemsize
    cost = pl.CostEstimate(
        flops=10 * B * S * H,
        transcendentals=B * S,
        bytes_accessed=B * S * H * (2 * itemsize + 4) + B * S * H * itemsize,
    )

    out2d = pl.pallas_call(
        kernel,
        out_shape=jax.ShapeDtypeStruct((B * s_pad, H), word_table.dtype),
        grid_spec=pltpu.PrefetchScalarGridSpec(
            num_scalar_prefetch=1,                     # token ids -> SMEM
            grid=(B, n_seq_tiles),
            in_specs=[
                pl.BlockSpec(memory_space=pl.ANY),                    # word table stays in HBM
                pl.BlockSpec((ts, H), lambda b, j, ids: (j, 0)),      # position tile
                pl.BlockSpec((1, H), lambda b, j, ids: (0, 0)),       # LN gamma (grid-invariant)
                pl.BlockSpec((1, H), lambda b, j, ids: (0, 0)),       # LN beta  (grid-invariant)
            ],
            out_specs=pl.BlockSpec((ts, H),
                                   lambda b, j, ids: (b * n_seq_tiles + j, 0)),
            scratch_shapes=[
                pltpu.VMEM((ts, H), word_table.dtype),    # gathered word rows
                pltpu.SemaphoreType.DMA((n_chunks,)),     # one DMA sem per chunk
            ],
        ),
        compiler_params=pltpu.CompilerParams(
            dimension_semantics=("parallel", "parallel"),  # megacore on v7x
            vmem_limit_bytes=32 * 1024 * 1024,             # small working set; fits all chips
        ),
        cost_estimate=cost,
    )(ids_flat, word_table, pos_slice, gamma2, beta2)

    return out2d.reshape(B, s_pad, H)[:, :S, :]


def reference(input_ids, word_table, pos_table, gamma, beta, *, eps=1e-12,
              past_key_values_length=0):
    B, S = input_ids.shape
    we = word_table[input_ids]
    pe = pos_table[past_key_values_length:past_key_values_length + S][None, :, :]
    emb = (we + pe).astype(jnp.float32)
    mean = jnp.mean(emb, axis=-1, keepdims=True)
    var = jnp.mean(jnp.square(emb - mean), axis=-1, keepdims=True)
    normed = (emb - mean) * jax.lax.rsqrt(var + eps)
    return (normed * gamma + beta).astype(word_table.dtype)


if __name__ == "__main__":
    key = jax.random.PRNGKey(0)
    batch, seq, hidden = 2, 12, 128          # seq=12 exercises pad + multi-chunk path
    vocab, max_pos = 512, 64
    eps = 1e-12

    k_ids, k_w, k_p, k_g, k_b = jax.random.split(key, 5)
    input_ids = jax.random.randint(k_ids, (batch, seq), 0, vocab, dtype=jnp.int32)
    word_table = jax.random.normal(k_w, (vocab, hidden), dtype=jnp.float32) * 0.02
    pos_table = jax.random.normal(k_p, (max_pos, hidden), dtype=jnp.float32) * 0.02
    ln_gamma = jnp.ones((hidden,), jnp.float32) + 0.01 * jax.random.normal(k_g, (hidden,))
    ln_beta = 0.01 * jax.random.normal(k_b, (hidden,))

    out = bert_embeddings(input_ids, word_table, pos_table, ln_gamma, ln_beta, eps=eps)
    jax.block_until_ready(out)

    ref = reference(input_ids, word_table, pos_table, ln_gamma, ln_beta, eps=eps)
    assert out.shape == (batch, seq, hidden)
    assert jnp.allclose(out, ref, atol=1e-5, rtol=1e-5), "mismatch vs reference"

    print("KERNEL_OK")
</pallas_src>

<mosaic_0001>
module attributes {stable_mosaic.version = 11 : i64} {
  func.func @_bert_embeddings_kernel(%arg0: i32, %arg1: i32, %arg2: memref<32xi32, #tpu.memory_space<smem>>, %arg3: memref<512x128xf32, #tpu.memory_space<any>>, %arg4: memref<16x128xf32, #tpu.memory_space<vmem>>, %arg5: memref<1x128xf32, #tpu.memory_space<vmem>>, %arg6: memref<1x128xf32, #tpu.memory_space<vmem>>, %arg7: memref<16x128xf32, #tpu.memory_space<vmem>>, %arg8: memref<16x128xf32, #tpu.memory_space<vmem>>, %arg9: memref<2x!tpu.dma_semaphore, #tpu.memory_space<semaphore_mem>>) attributes {dimension_semantics = [#tpu.dimension_semantics<parallel>, #tpu.dimension_semantics<parallel>], iteration_bounds = array<i64: 2, 1>, scalar_prefetch = 1 : i64, scratch_operands = 2 : i64, tpu.core_type = #tpu.core_type<tc>, window_params = [{}, {transform_indices = @transform_1, window_bounds = array<i64: 16, 128>}, {pipeline_mode = #tpu.pipeline_mode<synchronous>, transform_indices = @transform_2, window_bounds = array<i64: 1, 128>}, {pipeline_mode = #tpu.pipeline_mode<synchronous>, transform_indices = @transform_3, window_bounds = array<i64: 1, 128>}, {transform_indices = @transform_4, window_bounds = array<i64: 16, 128>}]} {
    %c1_i32 = arith.constant 1 : i32
    %0 = arith.muli %arg0, %c1_i32 : i32
    %1 = arith.addi %0, %arg1 : i32
    %c16_i32 = arith.constant 16 : i32
    %2 = arith.muli %1, %c16_i32 : i32
    %c0 = arith.constant 0 : index
    %c0_0 = arith.constant 0 : index
    %3 = vector.load %arg5[%c0, %c0_0] : memref<1x128xf32, #tpu.memory_space<vmem>>, vector<1x128xf32>
    %c0_1 = arith.constant 0 : index
    %c0_2 = arith.constant 0 : index
    %4 = vector.load %arg6[%c0_1, %c0_2] : memref<1x128xf32, #tpu.memory_space<vmem>>, vector<1x128xf32>
    %c0_i32 = arith.constant 0 : i32
    %5 = arith.addi %2, %c0_i32 : i32
    %6 = arith.index_cast %5 : i32 to index
    %7 = memref.load %arg2[%6] : memref<32xi32, #tpu.memory_space<smem>>
    %c0_i32_3 = arith.constant 0 : i32
    %c0_i32_4 = arith.constant 0 : i32
    %8 = tpu.memref_slice %arg3[%7, %c0_i32_4] : memref<512x128xf32, #tpu.memory_space<any>> -> memref<1x128xf32, #tpu.memory_space<any>>
    %c0_i32_5 = arith.constant 0 : i32
    %c0_i32_6 = arith.constant 0 : i32
    %9 = tpu.memref_slice %arg8[%c0_i32_5, %c0_i32_6] : memref<16x128xf32, #tpu.memory_space<vmem>> -> memref<1x128xf32, #tpu.memory_space<vmem>>
    %10 = tpu.memref_slice %arg9[%c0_i32_3] : memref<2x!tpu.dma_semaphore, #tpu.memory_space<semaphore_mem>> -> memref<1x!tpu.dma_semaphore, #tpu.memory_space<semaphore_mem>>
    %11 = tpu.memref_squeeze %10 : memref<1x!tpu.dma_semaphore, #tpu.memory_space<semaphore_mem>> -> memref<!tpu.dma_semaphore, #tpu.memory_space<semaphore_mem>>
    tpu.enqueue_dma source(%8 : memref<1x128xf32, #tpu.memory_space<any>>) target(%9 : memref<1x128xf32, #tpu.memory_space<vmem>>) target_semaphore(%11 : memref<!tpu.dma_semaphore, #tpu.memory_space<semaphore_mem>>)
    %c1_i32_7 = arith.constant 1 : i32
    %12 = arith.addi %2, %c1_i32_7 : i32
    %13 = arith.index_cast %12 : i32 to index
    %14 = memref.load %arg2[%13] : memref<32xi32, #tpu.memory_space<smem>>
    %c0_i32_8 = arith.constant 0 : i32
    %c0_i32_9 = arith.constant 0 : i32
    %15 = tpu.memref_slice %arg3[%14, %c0_i32_9] : memref<512x128xf32, #tpu.memory_space<any>> -> memref<1x128xf32, #tpu.memory_space<any>>
    %c1_i32_10 = arith.constant 1 : i32
    %c0_i32_11 = arith.constant 0 : i32
    %16 = tpu.memref_slice %arg8[%c1_i32_10, %c0_i32_11] : memref<16x128xf32, #tpu.memory_space<vmem>> -> memref<1x128xf32, #tpu.memory_space<vmem>>
    %17 = tpu.memref_slice %arg9[%c0_i32_8] : memref<2x!tpu.dma_semaphore, #tpu.memory_space<semaphore_mem>> -> memref<1x!tpu.dma_semaphore, #tpu.memory_space<semaphore_mem>>
    %18 = tpu.memref_squeeze %17 : memref<1x!tpu.dma_semaphore, #tpu.memory_space<semaphore_mem>> -> memref<!tpu.dma_semaphore, #tpu.memory_space<semaphore_mem>>
    tpu.enqueue_dma source(%15 : memref<1x128xf32, #tpu.memory_space<any>>) target(%16 : memref<1x128xf32, #tpu.memory_space<vmem>>) target_semaphore(%18 : memref<!tpu.dma_semaphore, #tpu.memory_space<semaphore_mem>>)
    %c2_i32 = arith.constant 2 : i32
    %19 = arith.addi %2, %c2_i32 : i32
    %20 = arith.index_cast %19 : i32 to index
    %21 = memref.load %arg2[%20] : memref<32xi32, #tpu.memory_space<smem>>
    %c0_i32_12 = arith.constant 0 : i32
    %c0_i32_13 = arith.constant 0 : i32
    %22 = tpu.memref_slice %arg3[%21, %c0_i32_13] : memref<512x128xf32, #tpu.memory_space<any>> -> memref<1x128xf32, #tpu.memory_space<any>>
    %c2_i32_14 = arith.constant 2 : i32
    %c0_i32_15 = arith.constant 0 : i32
    %23 = tpu.memref_slice %arg8[%c2_i32_14, %c0_i32_15] : memref<16x128xf32, #tpu.memory_space<vmem>> -> memref<1x128xf32, #tpu.memory_space<vmem>>
    %24 = tpu.memref_slice %arg9[%c0_i32_12] : memref<2x!tpu.dma_semaphore, #tpu.memory_space<semaphore_mem>> -> memref<1x!tpu.dma_semaphore, #tpu.memory_space<semaphore_mem>>
    %25 = tpu.memref_squeeze %24 : memref<1x!tpu.dma_semaphore, #tpu.memory_space<semaphore_mem>> -> memref<!tpu.dma_semaphore, #tpu.memory_space<semaphore_mem>>
    tpu.enqueue_dma source(%22 : memref<1x128xf32, #tpu.memory_space<any>>) target(%23 : memref<1x128xf32, #tpu.memory_space<vmem>>) target_semaphore(%25 : memref<!tpu.dma_semaphore, #tpu.memory_space<semaphore_mem>>)
    %c3_i32 = arith.constant 3 : i32
    %26 = arith.addi %2, %c3_i32 : i32
    %27 = arith.index_cast %26 : i32 to index
    %28 = memref.load %arg2[%27] : memref<32xi32, #tpu.memory_space<smem>>
    %c0_i32_16 = arith.constant 0 : i32
    %c0_i32_17 = arith.constant 0 : i32
    %29 = tpu.memref_slice %arg3[%28, %c0_i32_17] : memref<512x128xf32, #tpu.memory_space<any>> -> memref<1x128xf32, #tpu.memory_space<any>>
    %c3_i32_18 = arith.constant 3 : i32
    %c0_i32_19 = arith.constant 0 : i32
    %30 = tpu.memref_slice %arg8[%c3_i32_18, %c0_i32_19] : memref<16x128xf32, #tpu.memory_space<vmem>> -> memref<1x128xf32, #tpu.memory_space<vmem>>
    %31 = tpu.memref_slice %arg9[%c0_i32_16] : memref<2x!tpu.dma_semaphore, #tpu.memory_space<semaphore_mem>> -> memref<1x!tpu.dma_semaphore, #tpu.memory_space<semaphore_mem>>
    %32 = tpu.memref_squeeze %31 : memref<1x!tpu.dma_semaphore, #tpu.memory_space<semaphore_mem>> -> memref<!tpu.dma_semaphore, #tpu.memory_space<semaphore_mem>>
    tpu.enqueue_dma source(%29 : memref<1x128xf32, #tpu.memory_space<any>>) target(%30 : memref<1x128xf32, #tpu.memory_space<vmem>>) target_semaphore(%32 : memref<!tpu.dma_semaphore, #tpu.memory_space<semaphore_mem>>)
    %c4_i32 = arith.constant 4 : i32
    %33 = arith.addi %2, %c4_i32 : i32
    %34 = arith.index_cast %33 : i32 to index
    %35 = memref.load %arg2[%34] : memref<32xi32, #tpu.memory_space<smem>>
    %c0_i32_20 = arith.constant 0 : i32
    %c0_i32_21 = arith.constant 0 : i32
    %36 = tpu.memref_slice %arg3[%35, %c0_i32_21] : memref<512x128xf32, #tpu.memory_space<any>> -> memref<1x128xf32, #tpu.memory_space<any>>
    %c4_i32_22 = arith.constant 4 : i32
    %c0_i32_23 = arith.constant 0 : i32
    %37 = tpu.memref_slice %arg8[%c4_i32_22, %c0_i32_23] : memref<16x128xf32, #tpu.memory_space<vmem>> -> memref<1x128xf32, #tpu.memory_space<vmem>>
    %38 = tpu.memref_slice %arg9[%c0_i32_20] : memref<2x!tpu.dma_semaphore, #tpu.memory_space<semaphore_mem>> -> memref<1x!tpu.dma_semaphore, #tpu.memory_space<semaphore_mem>>
    %39 = tpu.memref_squeeze %38 : memref<1x!tpu.dma_semaphore, #tpu.memory_space<semaphore_mem>> -> memref<!tpu.dma_semaphore, #tpu.memory_space<semaphore_mem>>
    tpu.enqueue_dma source(%36 : memref<1x128xf32, #tpu.memory_space<any>>) target(%37 : memref<1x128xf32, #tpu.memory_space<vmem>>) target_semaphore(%39 : memref<!tpu.dma_semaphore, #tpu.memory_space<semaphore_mem>>)
    %c5_i32 = arith.constant 5 : i32
    %40 = arith.addi %2, %c5_i32 : i32
    %41 = arith.index_cast %40 : i32 to index
    %42 = memref.load %arg2[%41] : memref<32xi32, #tpu.memory_space<smem>>
    %c0_i32_24 = arith.constant 0 : i32
    %c0_i32_25 = arith.constant 0 : i32
    %43 = tpu.memref_slice %arg3[%42, %c0_i32_25] : memref<512x128xf32, #tpu.memory_space<any>> -> memref<1x128xf32, #tpu.memory_space<any>>
    %c5_i32_26 = arith.constant 5 : i32
    %c0_i32_27 = arith.constant 0 : i32
    %44 = tpu.memref_slice %arg8[%c5_i32_26, %c0_i32_27] : memref<16x128xf32, #tpu.memory_space<vmem>> -> memref<1x128xf32, #tpu.memory_space<vmem>>
    %45 = tpu.memref_slice %arg9[%c0_i32_24] : memref<2x!tpu.dma_semaphore, #tpu.memory_space<semaphore_mem>> -> memref<1x!tpu.dma_semaphore, #tpu.memory_space<semaphore_mem>>
    %46 = tpu.memref_squeeze %45 : memref<1x!tpu.dma_semaphore, #tpu.memory_space<semaphore_mem>> -> memref<!tpu.dma_semaphore, #tpu.memory_space<semaphore_mem>>
    tpu.enqueue_dma source(%43 : memref<1x128xf32, #tpu.memory_space<any>>) target(%44 : memref<1x128xf32, #tpu.memory_space<vmem>>) target_semaphore(%46 : memref<!tpu.dma_semaphore, #tpu.memory_space<semaphore_mem>>)
    %c6_i32 = arith.constant 6 : i32
    %47 = arith.addi %2, %c6_i32 : i32
    %48 = arith.index_cast %47 : i32 to index
    %49 = memref.load %arg2[%48] : memref<32xi32, #tpu.memory_space<smem>>
    %c0_i32_28 = arith.constant 0 : i32
    %c0_i32_29 = arith.constant 0 : i32
    %50 = tpu.memref_slice %arg3[%49, %c0_i32_29] : memref<512x128xf32, #tpu.memory_space<any>> -> memref<1x128xf32, #tpu.memory_space<any>>
    %c6_i32_30 = arith.constant 6 : i32
    %c0_i32_31 = arith.constant 0 : i32
    %51 = tpu.memref_slice %arg8[%c6_i32_30, %c0_i32_31] : memref<16x128xf32, #tpu.memory_space<vmem>> -> memref<1x128xf32, #tpu.memory_space<vmem>>
    %52 = tpu.memref_slice %arg9[%c0_i32_28] : memref<2x!tpu.dma_semaphore, #tpu.memory_space<semaphore_mem>> -> memref<1x!tpu.dma_semaphore, #tpu.memory_space<semaphore_mem>>
    %53 = tpu.memref_squeeze %52 : memref<1x!tpu.dma_semaphore, #tpu.memory_space<semaphore_mem>> -> memref<!tpu.dma_semaphore, #tpu.memory_space<semaphore_mem>>
    tpu.enqueue_dma source(%50 : memref<1x128xf32, #tpu.memory_space<any>>) target(%51 : memref<1x128xf32, #tpu.memory_space<vmem>>) target_semaphore(%53 : memref<!tpu.dma_semaphore, #tpu.memory_space<semaphore_mem>>)
    %c7_i32 = arith.constant 7 : i32
    %54 = arith.addi %2, %c7_i32 : i32
    %55 = arith.index_cast %54 : i32 to index
    %56 = memref.load %arg2[%55] : memref<32xi32, #tpu.memory_space<smem>>
    %c0_i32_32 = arith.constant 0 : i32
    %c0_i32_33 = arith.constant 0 : i32
    %57 = tpu.memref_slice %arg3[%56, %c0_i32_33] : memref<512x128xf32, #tpu.memory_space<any>> -> memref<1x128xf32, #tpu.memory_space<any>>
    %c7_i32_34 = arith.constant 7 : i32
    %c0_i32_35 = arith.constant 0 : i32
    %58 = tpu.memref_slice %arg8[%c7_i32_34, %c0_i32_35] : memref<16x128xf32, #tpu.memory_space<vmem>> -> memref<1x128xf32, #tpu.memory_space<vmem>>
    %59 = tpu.memref_slice %arg9[%c0_i32_32] : memref<2x!tpu.dma_semaphore, #tpu.memory_space<semaphore_mem>> -> memref<1x!tpu.dma_semaphore, #tpu.memory_space<semaphore_mem>>
    %60 = tpu.memref_squeeze %59 : memref<1x!tpu.dma_semaphore, #tpu.memory_space<semaphore_mem>> -> memref<!tpu.dma_semaphore, #tpu.memory_space<semaphore_mem>>
    tpu.enqueue_dma source(%57 : memref<1x128xf32, #tpu.memory_space<any>>) target(%58 : memref<1x128xf32, #tpu.memory_space<vmem>>) target_semaphore(%60 : memref<!tpu.dma_semaphore, #tpu.memory_space<semaphore_mem>>)
    %c8_i32 = arith.constant 8 : i32
    %61 = arith.addi %2, %c8_i32 : i32
    %62 = arith.index_cast %61 : i32 to index
    %63 = memref.load %arg2[%62] : memref<32xi32, #tpu.memory_space<smem>>
    %c1_i32_36 = arith.constant 1 : i32
    %c0_i32_37 = arith.constant 0 : i32
    %64 = tpu.memref_slice %arg3[%63, %c0_i32_37] : memref<512x128xf32, #tpu.memory_space<any>> -> memref<1x128xf32, #tpu.memory_space<any>>
    %c8_i32_38 = arith.constant 8 : i32
    %c0_i32_39 = arith.constant 0 : i32
    %65 = tpu.memref_slice %arg8[%c8_i32_38, %c0_i32_39] : memref<16x128xf32, #tpu.memory_space<vmem>> -> memref<1x128xf32, #tpu.memory_space<vmem>>
    %66 = tpu.memref_slice %arg9[%c1_i32_36] : memref<2x!tpu.dma_semaphore, #tpu.memory_space<semaphore_mem>> -> memref<1x!tpu.dma_semaphore, #tpu.memory_space<semaphore_mem>>
    %67 = tpu.memref_squeeze %66 : memref<1x!tpu.dma_semaphore, #tpu.memory_space<semaphore_mem>> -> memref<!tpu.dma_semaphore, #tpu.memory_space<semaphore_mem>>
    tpu.enqueue_dma source(%64 : memref<1x128xf32, #tpu.memory_space<any>>) target(%65 : memref<1x128xf32, #tpu.memory_space<vmem>>) target_semaphore(%67 : memref<!tpu.dma_semaphore, #tpu.memory_space<semaphore_mem>>)
    %c9_i32 = arith.constant 9 : i32
    %68 = arith.addi %2, %c9_i32 : i32
    %69 = arith.index_cast %68 : i32 to index
    %70 = memref.load %arg2[%69] : memref<32xi32, #tpu.memory_space<smem>>
    %c1_i32_40 = arith.constant 1 : i32
    %c0_i32_41 = arith.constant 0 : i32
    %71 = tpu.memref_slice %arg3[%70, %c0_i32_41] : memref<512x128xf32, #tpu.memory_space<any>> -> memref<1x128xf32, #tpu.memory_space<any>>
    %c9_i32_42 = arith.constant 9 : i32
    %c0_i32_43 = arith.constant 0 : i32
    %72 = tpu.memref_slice %arg8[%c9_i32_42, %c0_i32_43] : memref<16x128xf32, #tpu.memory_space<vmem>> -> memref<1x128xf32, #tpu.memory_space<vmem>>
    %73 = tpu.memref_slice %arg9[%c1_i32_40] : memref<2x!tpu.dma_semaphore, #tpu.memory_space<semaphore_mem>> -> memref<1x!tpu.dma_semaphore, #tpu.memory_space<semaphore_mem>>
    %74 = tpu.memref_squeeze %73 : memref<1x!tpu.dma_semaphore, #tpu.memory_space<semaphore_mem>> -> memref<!tpu.dma_semaphore, #tpu.memory_space<semaphore_mem>>
    tpu.enqueue_dma source(%71 : memref<1x128xf32, #tpu.memory_space<any>>) target(%72 : memref<1x128xf32, #tpu.memory_space<vmem>>) target_semaphore(%74 : memref<!tpu.dma_semaphore, #tpu.memory_space<semaphore_mem>>)
    %c10_i32 = arith.constant 10 : i32
    %75 = arith.addi %2, %c10_i32 : i32
    %76 = arith.index_cast %75 : i32 to index
    %77 = memref.load %arg2[%76] : memref<32xi32, #tpu.memory_space<smem>>
    %c1_i32_44 = arith.constant 1 : i32
    %c0_i32_45 = arith.constant 0 : i32
    %78 = tpu.memref_slice %arg3[%77, %c0_i32_45] : memref<512x128xf32, #tpu.memory_space<any>> -> memref<1x128xf32, #tpu.memory_space<any>>
    %c10_i32_46 = arith.constant 10 : i32
    %c0_i32_47 = arith.constant 0 : i32
    %79 = tpu.memref_slice %arg8[%c10_i32_46, %c0_i32_47] : memref<16x128xf32, #tpu.memory_space<vmem>> -> memref<1x128xf32, #tpu.memory_space<vmem>>
    %80 = tpu.memref_slice %arg9[%c1_i32_44] : memref<2x!tpu.dma_semaphore, #tpu.memory_space<semaphore_mem>> -> memref<1x!tpu.dma_semaphore, #tpu.memory_space<semaphore_mem>>
    %81 = tpu.memref_squeeze %80 : memref<1x!tpu.dma_semaphore, #tpu.memory_space<semaphore_mem>> -> memref<!tpu.dma_semaphore, #tpu.memory_space<semaphore_mem>>
    tpu.enqueue_dma source(%78 : memref<1x128xf32, #tpu.memory_space<any>>) target(%79 : memref<1x128xf32, #tpu.memory_space<vmem>>) target_semaphore(%81 : memref<!tpu.dma_semaphore, #tpu.memory_space<semaphore_mem>>)
    %c11_i32 = arith.constant 11 : i32
    %82 = arith.addi %2, %c11_i32 : i32
    %83 = arith.index_cast %82 : i32 to index
    %84 = memref.load %arg2[%83] : memref<32xi32, #tpu.memory_space<smem>>
    %c1_i32_48 = arith.constant 1 : i32
    %c0_i32_49 = arith.constant 0 : i32
    %85 = tpu.memref_slice %arg3[%84, %c0_i32_49] : memref<512x128xf32, #tpu.memory_space<any>> -> memref<1x128xf32, #tpu.memory_space<any>>
    %c11_i32_50 = arith.constant 11 : i32
    %c0_i32_51 = arith.constant 0 : i32
    %86 = tpu.memref_slice %arg8[%c11_i32_50, %c0_i32_51] : memref<16x128xf32, #tpu.memory_space<vmem>> -> memref<1x128xf32, #tpu.memory_space<vmem>>
    %87 = tpu.memref_slice %arg9[%c1_i32_48] : memref<2x!tpu.dma_semaphore, #tpu.memory_space<semaphore_mem>> -> memref<1x!tpu.dma_semaphore, #tpu.memory_space<semaphore_mem>>
    %88 = tpu.memref_squeeze %87 : memref<1x!tpu.dma_semaphore, #tpu.memory_space<semaphore_mem>> -> memref<!tpu.dma_semaphore, #tpu.memory_space<semaphore_mem>>
    tpu.enqueue_dma source(%85 : memref<1x128xf32, #tpu.memory_space<any>>) target(%86 : memref<1x128xf32, #tpu.memory_space<vmem>>) target_semaphore(%88 : memref<!tpu.dma_semaphore, #tpu.memory_space<semaphore_mem>>)
    %c12_i32 = arith.constant 12 : i32
    %89 = arith.addi %2, %c12_i32 : i32
    %90 = arith.index_cast %89 : i32 to index
    %91 = memref.load %arg2[%90] : memref<32xi32, #tpu.memory_space<smem>>
    %c1_i32_52 = arith.constant 1 : i32
    %c0_i32_53 = arith.constant 0 : i32
    %92 = tpu.memref_slice %arg3[%91, %c0_i32_53] : memref<512x128xf32, #tpu.memory_space<any>> -> memref<1x128xf32, #tpu.memory_space<any>>
    %c12_i32_54 = arith.constant 12 : i32
    %c0_i32_55 = arith.constant 0 : i32
    %93 = tpu.memref_slice %arg8[%c12_i32_54, %c0_i32_55] : memref<16x128xf32, #tpu.memory_space<vmem>> -> memref<1x128xf32, #tpu.memory_space<vmem>>
    %94 = tpu.memref_slice %arg9[%c1_i32_52] : memref<2x!tpu.dma_semaphore, #tpu.memory_space<semaphore_mem>> -> memref<1x!tpu.dma_semaphore, #tpu.memory_space<semaphore_mem>>
    %95 = tpu.memref_squeeze %94 : memref<1x!tpu.dma_semaphore, #tpu.memory_space<semaphore_mem>> -> memref<!tpu.dma_semaphore, #tpu.memory_space<semaphore_mem>>
    tpu.enqueue_dma source(%92 : memref<1x128xf32, #tpu.memory_space<any>>) target(%93 : memref<1x128xf32, #tpu.memory_space<vmem>>) target_semaphore(%95 : memref<!tpu.dma_semaphore, #tpu.memory_space<semaphore_mem>>)
    %c13_i32 = arith.constant 13 : i32
    %96 = arith.addi %2, %c13_i32 : i32
    %97 = arith.index_cast %96 : i32 to index
    %98 = memref.load %arg2[%97] : memref<32xi32, #tpu.memory_space<smem>>
    %c1_i32_56 = arith.constant 1 : i32
    %c0_i32_57 = arith.constant 0 : i32
    %99 = tpu.memref_slice %arg3[%98, %c0_i32_57] : memref<512x128xf32, #tpu.memory_space<any>> -> memref<1x128xf32, #tpu.memory_space<any>>
    %c13_i32_58 = arith.constant 13 : i32
    %c0_i32_59 = arith.constant 0 : i32
    %100 = tpu.memref_slice %arg8[%c13_i32_58, %c0_i32_59] : memref<16x128xf32, #tpu.memory_space<vmem>> -> memref<1x128xf32, #tpu.memory_space<vmem>>
    %101 = tpu.memref_slice %arg9[%c1_i32_56] : memref<2x!tpu.dma_semaphore, #tpu.memory_space<semaphore_mem>> -> memref<1x!tpu.dma_semaphore, #tpu.memory_space<semaphore_mem>>
    %102 = tpu.memref_squeeze %101 : memref<1x!tpu.dma_semaphore, #tpu.memory_space<semaphore_mem>> -> memref<!tpu.dma_semaphore, #tpu.memory_space<semaphore_mem>>
    tpu.enqueue_dma source(%99 : memref<1x128xf32, #tpu.memory_space<any>>) target(%100 : memref<1x128xf32, #tpu.memory_space<vmem>>) target_semaphore(%102 : memref<!tpu.dma_semaphore, #tpu.memory_space<semaphore_mem>>)
    %c14_i32 = arith.constant 14 : i32
    %103 = arith.addi %2, %c14_i32 : i32
    %104 = arith.index_cast %103 : i32 to index
    %105 = memref.load %arg2[%104] : memref<32xi32, #tpu.memory_space<smem>>
    %c1_i32_60 = arith.constant 1 : i32
    %c0_i32_61 = arith.constant 0 : i32
    %106 = tpu.memref_slice %arg3[%105, %c0_i32_61] : memref<512x128xf32, #tpu.memory_space<any>> -> memref<1x128xf32, #tpu.memory_space<any>>
    %c14_i32_62 = arith.constant 14 : i32
    %c0_i32_63 = arith.constant 0 : i32
    %107 = tpu.memref_slice %arg8[%c14_i32_62, %c0_i32_63] : memref<16x128xf32, #tpu.memory_space<vmem>> -> memref<1x128xf32, #tpu.memory_space<vmem>>
    %108 = tpu.memref_slice %arg9[%c1_i32_60] : memref<2x!tpu.dma_semaphore, #tpu.memory_space<semaphore_mem>> -> memref<1x!tpu.dma_semaphore, #tpu.memory_space<semaphore_mem>>
    %109 = tpu.memref_squeeze %108 : memref<1x!tpu.dma_semaphore, #tpu.memory_space<semaphore_mem>> -> memref<!tpu.dma_semaphore, #tpu.memory_space<semaphore_mem>>
    tpu.enqueue_dma source(%106 : memref<1x128xf32, #tpu.memory_space<any>>) target(%107 : memref<1x128xf32, #tpu.memory_space<vmem>>) target_semaphore(%109 : memref<!tpu.dma_semaphore, #tpu.memory_space<semaphore_mem>>)
    %c15_i32 = arith.constant 15 : i32
    %110 = arith.addi %2, %c15_i32 : i32
    %111 = arith.index_cast %110 : i32 to index
    %112 = memref.load %arg2[%111] : memref<32xi32, #tpu.memory_space<smem>>
    %c1_i32_64 = arith.constant 1 : i32
    %c0_i32_65 = arith.constant 0 : i32
    %113 = tpu.memref_slice %arg3[%112, %c0_i32_65] : memref<512x128xf32, #tpu.memory_space<any>> -> memref<1x128xf32, #tpu.memory_space<any>>
    %c15_i32_66 = arith.constant 15 : i32
    %c0_i32_67 = arith.constant 0 : i32
    %114 = tpu.memref_slice %arg8[%c15_i32_66, %c0_i32_67] : memref<16x128xf32, #tpu.memory_space<vmem>> -> memref<1x128xf32, #tpu.memory_space<vmem>>
    %115 = tpu.memref_slice %arg9[%c1_i32_64] : memref<2x!tpu.dma_semaphore, #tpu.memory_space<semaphore_mem>> -> memref<1x!tpu.dma_semaphore, #tpu.memory_space<semaphore_mem>>
    %116 = tpu.memref_squeeze %115 : memref<1x!tpu.dma_semaphore, #tpu.memory_space<semaphore_mem>> -> memref<!tpu.dma_semaphore, #tpu.memory_space<semaphore_mem>>
    tpu.enqueue_dma source(%113 : memref<1x128xf32, #tpu.memory_space<any>>) target(%114 : memref<1x128xf32, #tpu.memory_space<vmem>>) target_semaphore(%116 : memref<!tpu.dma_semaphore, #tpu.memory_space<semaphore_mem>>)
    %c0_i32_68 = arith.constant 0 : i32
    %c0_i32_69 = arith.constant 0 : i32
    %c0_i32_70 = arith.constant 0 : i32
    %117 = tpu.memref_slice %arg8[%c0_i32_69, %c0_i32_70] : memref<16x128xf32, #tpu.memory_space<vmem>> -> memref<8x128xf32, #tpu.memory_space<vmem>>
    %c0_i32_71 = arith.constant 0 : i32
    %c0_i32_72 = arith.constant 0 : i32
    %118 = tpu.memref_slice %arg8[%c0_i32_71, %c0_i32_72] : memref<16x128xf32, #tpu.memory_space<vmem>> -> memref<8x128xf32, #tpu.memory_space<vmem>>
    %119 = tpu.memref_slice %arg9[%c0_i32_68] : memref<2x!tpu.dma_semaphore, #tpu.memory_space<semaphore_mem>> -> memref<1x!tpu.dma_semaphore, #tpu.memory_space<semaphore_mem>>
    %120 = tpu.memref_squeeze %119 : memref<1x!tpu.dma_semaphore, #tpu.memory_space<semaphore_mem>> -> memref<!tpu.dma_semaphore, #tpu.memory_space<semaphore_mem>>
    tpu.wait_dma2 semaphore(%120 : memref<!tpu.dma_semaphore, #tpu.memory_space<semaphore_mem>>) src(%117 : memref<8x128xf32, #tpu.memory_space<vmem>>) dst(%118 : memref<8x128xf32, #tpu.memory_space<vmem>>)
    %c0_73 = arith.constant 0 : index
    %c0_74 = arith.constant 0 : index
    %121 = vector.load %arg8[%c0_73, %c0_74] : memref<16x128xf32, #tpu.memory_space<vmem>>, vector<8x128xf32>
    %c0_75 = arith.constant 0 : index
    %c0_76 = arith.constant 0 : index
    %122 = vector.load %arg4[%c0_75, %c0_76] : memref<16x128xf32, #tpu.memory_space<vmem>>, vector<8x128xf32>
    %123 = arith.addf %121, %122 : vector<8x128xf32>
    %cst = arith.constant dense<0.000000e+00> : vector<8xf32>
    %124 = vector.multi_reduction <add>, %123, %cst [1] : vector<8x128xf32> to vector<8xf32>
    %125 = vector.shape_cast %124 : vector<8xf32> to vector<8x1xf32>
    %cst_77 = arith.constant 1.280000e+02 : f32
    %126 = vector.broadcast %cst_77 : f32 to vector<8x1xf32>
    %127 = arith.divf %125, %126 : vector<8x1xf32>
    %128 = vector.broadcast %127 : vector<8x1xf32> to vector<8x128xf32>
    %129 = arith.subf %123, %128 : vector<8x128xf32>
    %130 = arith.mulf %129, %129 : vector<8x128xf32>
    %cst_78 = arith.constant dense<0.000000e+00> : vector<8xf32>
    %131 = vector.multi_reduction <add>, %130, %cst_78 [1] : vector<8x128xf32> to vector<8xf32>
    %132 = vector.shape_cast %131 : vector<8xf32> to vector<8x1xf32>
    %cst_79 = arith.constant 1.280000e+02 : f32
    %133 = vector.broadcast %cst_79 : f32 to vector<8x1xf32>
    %134 = arith.divf %132, %133 : vector<8x1xf32>
    %135 = vector.broadcast %127 : vector<8x1xf32> to vector<8x128xf32>
    %136 = arith.subf %123, %135 : vector<8x128xf32>
    %cst_80 = arith.constant 9.99999996E-13 : f32
    %137 = vector.broadcast %cst_80 : f32 to vector<8x1xf32>
    %138 = arith.addf %134, %137 : vector<8x1xf32>
    %139 = math.rsqrt %138 : vector<8x1xf32>
    %140 = vector.broadcast %139 : vector<8x1xf32> to vector<8x128xf32>
    %141 = arith.mulf %136, %140 : vector<8x128xf32>
    %142 = vector.broadcast %3 : vector<1x128xf32> to vector<8x128xf32>
    %143 = arith.mulf %141, %142 : vector<8x128xf32>
    %144 = vector.broadcast %4 : vector<1x128xf32> to vector<8x128xf32>
    %145 = arith.addf %143, %144 : vector<8x128xf32>
    %c0_81 = arith.constant 0 : index
    %c0_82 = arith.constant 0 : index
    %146 = vector.load %arg7[%c0_81, %c0_82] : memref<16x128xf32, #tpu.memory_space<vmem>>, vector<8x128xf32>
    tpu.vector_store %arg7[%c0_81, %c0_82], %145 {strides = array<i32>} : memref<16x128xf32, #tpu.memory_space<vmem>>, vector<8x128xf32>,
    %c1_i32_83 = arith.constant 1 : i32
    %c8_i32_84 = arith.constant 8 : i32
    %c0_i32_85 = arith.constant 0 : i32
    %147 = tpu.memref_slice %arg8[%c8_i32_84, %c0_i32_85] : memref<16x128xf32, #tpu.memory_space<vmem>> -> memref<8x128xf32, #tpu.memory_space<vmem>>
    %c8_i32_86 = arith.constant 8 : i32
    %c0_i32_87 = arith.constant 0 : i32
    %148 = tpu.memref_slice %arg8[%c8_i32_86, %c0_i32_87] : memref<16x128xf32, #tpu.memory_space<vmem>> -> memref<8x128xf32, #tpu.memory_space<vmem>>
    %149 = tpu.memref_slice %arg9[%c1_i32_83] : memref<2x!tpu.dma_semaphore, #tpu.memory_space<semaphore_mem>> -> memref<1x!tpu.dma_semaphore, #tpu.memory_space<semaphore_mem>>
    %150 = tpu.memref_squeeze %149 : memref<1x!tpu.dma_semaphore, #tpu.memory_space<semaphore_mem>> -> memref<!tpu.dma_semaphore, #tpu.memory_space<semaphore_mem>>
    tpu.wait_dma2 semaphore(%150 : memref<!tpu.dma_semaphore, #tpu.memory_space<semaphore_mem>>) src(%147 : memref<8x128xf32, #tpu.memory_space<vmem>>) dst(%148 : memref<8x128xf32, #tpu.memory_space<vmem>>)
    %c8 = arith.constant 8 : index
    %c0_88 = arith.constant 0 : index
    %151 = vector.load %arg8[%c8, %c0_88] : memref<16x128xf32, #tpu.memory_space<vmem>>, vector<8x128xf32>
    %c8_89 = arith.constant 8 : index
    %c0_90 = arith.constant 0 : index
    %152 = vector.load %arg4[%c8_89, %c0_90] : memref<16x128xf32, #tpu.memory_space<vmem>>, vector<8x128xf32>
    %153 = arith.addf %151, %152 : vector<8x128xf32>
    %cst_91 = arith.constant dense<0.000000e+00> : vector<8xf32>
    %154 = vector.multi_reduction <add>, %153, %cst_91 [1] : vector<8x128xf32> to vector<8xf32>
    %155 = vector.shape_cast %154 : vector<8xf32> to vector<8x1xf32>
    %cst_92 = arith.constant 1.280000e+02 : f32
    %156 = vector.broadcast %cst_92 : f32 to vector<8x1xf32>
    %157 = arith.divf %155, %156 : vector<8x1xf32>
    %158 = vector.broadcast %157 : vector<8x1xf32> to vector<8x128xf32>
    %159 = arith.subf %153, %158 : vector<8x128xf32>
    %160 = arith.mulf %159, %159 : vector<8x128xf32>
    %cst_93 = arith.constant dense<0.000000e+00> : vector<8xf32>
    %161 = vector.multi_reduction <add>, %160, %cst_93 [1] : vector<8x128xf32> to vector<8xf32>
    %162 = vector.shape_cast %161 : vector<8xf32> to vector<8x1xf32>
    %cst_94 = arith.constant 1.280000e+02 : f32
    %163 = vector.broadcast %cst_94 : f32 to vector<8x1xf32>
    %164 = arith.divf %162, %163 : vector<8x1xf32>
    %165 = vector.broadcast %157 : vector<8x1xf32> to vector<8x128xf32>
    %166 = arith.subf %153, %165 : vector<8x128xf32>
    %cst_95 = arith.constant 9.99999996E-13 : f32
    %167 = vector.broadcast %cst_95 : f32 to vector<8x1xf32>
    %168 = arith.addf %164, %167 : vector<8x1xf32>
    %169 = math.rsqrt %168 : vector<8x1xf32>
    %170 = vector.broadcast %169 : vector<8x1xf32> to vector<8x128xf32>
    %171 = arith.mulf %166, %170 : vector<8x128xf32>
    %172 = vector.broadcast %3 : vector<1x128xf32> to vector<8x128xf32>
    %173 = arith.mulf %171, %172 : vector<8x128xf32>
    %174 = vector.broadcast %4 : vector<1x128xf32> to vector<8x128xf32>
    %175 = arith.addf %173, %174 : vector<8x128xf32>
    %c8_96 = arith.constant 8 : index
    %c0_97 = arith.constant 0 : index
    %176 = vector.load %arg7[%c8_96, %c0_97] : memref<16x128xf32, #tpu.memory_space<vmem>>, vector<8x128xf32>
    tpu.vector_store %arg7[%c8_96, %c0_97], %175 {strides = array<i32>} : memref<16x128xf32, #tpu.memory_space<vmem>>, vector<8x128xf32>,
    return
  }
  func.func @transform_1(%arg0: i32, %arg1: i32, %arg2: memref<32xi32, #tpu.memory_space<smem>>) -> (i32, i32) {
    %c0_i32 = arith.constant 0 : i32
    %c0_i32_0 = arith.constant 0 : i32
    return %arg1, %c0_i32 : i32, i32
  }
  func.func @transform_2(%arg0: i32, %arg1: i32, %arg2: memref<32xi32, #tpu.memory_space<smem>>) -> (i32, i32) {
    %c0_i32 = arith.constant 0 : i32
    %c0_i32_0 = arith.constant 0 : i32
    %c0_i32_1 = arith.constant 0 : i32
    return %c0_i32, %c0_i32_0 : i32, i32
  }
  func.func @transform_3(%arg0: i32, %arg1: i32, %arg2: memref<32xi32, #tpu.memory_space<smem>>) -> (i32, i32) {
    %c0_i32 = arith.constant 0 : i32
    %c0_i32_0 = arith.constant 0 : i32
    %c0_i32_1 = arith.constant 0 : i32
    return %c0_i32, %c0_i32_0 : i32, i32
  }
  func.func @transform_4(%arg0: i32, %arg1: i32, %arg2: memref<32xi32, #tpu.memory_space<smem>>) -> (i32, i32) {
    %c1_i32 = arith.constant 1 : i32
    %0 = arith.muli %arg0, %c1_i32 : i32
    %1 = arith.addi %0, %arg1 : i32
    %c0_i32 = arith.constant 0 : i32
    %c0_i32_0 = arith.constant 0 : i32
    return %1, %c0_i32 : i32, i32
  }
}

</mosaic_0001>

<bundles_post_ra>
// kernel: tpu_custom_call.1
= control target key start
LH: loop header
LB: loop body
LE: loop exit
PB: predicated region body
PF: predicated region fallthrough
CT: control target
= control target key end

     0   :  { %s1291_s21 = smov [#allocation5]   ;;  %s1650_s0 = inlined_call_operand.hbm [shape: s32[32], index: 0, kind: input, shape index: {}]   ;;  %s1651_s1 = inlined_call_operand.hbm [shape: f32[512,128], index: 1, kind: input, shape index: {}]   ;;  %s1652_s2 = inlined_call_operand.hbm [shape: f32[16,128], index: 2, kind: input, shape index: {}]   ;;  %s1653_s3 = inlined_call_operand.vmem [shape: f32[1,128], index: 3, kind: input, shape index: {}]   ;;  %s1654_s4 = inlined_call_operand.vmem [shape: f32[1,128], index: 4, kind: input, shape index: {}]   ;;  %s1655_s5 = inlined_call_operand.hbm [shape: f32[32,128], index: 5, kind: output, shape index: {}]  }
   0x1   :  { %1661 = sst [smem:[#allocation50_spill]] %s1652_s2  ;;  %s11_s20 = sshll.u32 %s1650_s0, 4  ;;  %s12_s20 = int_to_ptr.hbm [resolvable:$true] %s11_s20 }
   0x2   :  { %1662 = sst [smem:[#allocation51_spill]] %s1653_s3 }
   0x3   :  { %1663 = sst [smem:[#allocation52_spill]] %s1654_s4 }
   0x4   :  { %14 = dma.hbm_to_smem %s12_s20, 16, %s1291_s21, [#allocation4] }
   0x5   :  { %1253 = dma.done.wait [#allocation4], 16 }
   0x6   :  { %1254 = vsyncadd [#allocation4], 4294967280 }
   0x7   :  { %17 = sfence }
   0x8   :  { %18 = vsyncpa [#allocation7], 0 }
   0x9   :  { %19 = vsyncpa [#allocation8], 0 }
   0xa   :  { %21 = vsyncpa [#allocation8 + $0x1], 0  ;;  %s1347_s22 = smov 0   ;;  %s1349_s23 = smov 0  }
   0xb   :  { %s1351_s24 = smov 0   ;;  %s1353_s25 = smov 0  }
   0xc   :  { %s1355_s26 = smov 0   ;;  %s1357_s0 = smov 0  }
   0xd LB: > { %s665_s27 = sadd.s32 4294967295, %s1289_s0   ;;  %s666_s28 = sadd.s32 4294967294, %s1289_s0   ;;  %s1289_s0 = sphi %s1357_s0, %s27_s0   ;;  %s1285_s26 = sphi %s1355_s26, %s1686_s26   ;;  %s1281_s25 = sphi %s1353_s25, %s1685_s25   ;;  %s1277_s24 = sphi %s1351_s24, %s1684_s24   ;;  %s1273_s23 = sphi %s1349_s23, %s1683_s23   ;;  %s1269_s22 = sphi %s1347_s22, %s1682_s22  }
   0xe   : > { %s39_s29 = sadd.s32 1, %s1285_s26  ;;  %s116_s30 = sadd.s32 1, %s1277_s24 }
   0xf   : > { %p41_p0 = scmp.ge.s32.totalorder %s39_s29, 2  ;;  %p126_p1 = scmp.ne.s32.totalorder %s1277_s24, %s1273_s23 }
  0x10   : > { %p127_p2 = scmp.eq.s32.totalorder %s665_s27, 1  ;;  %p132_p3 = scmp.ne.s32.totalorder %s1273_s23, %s1269_s22 }
  0x11   : > { %s1688_s29 = smov (%p41_p0, %s39_s29), 0  ;;  %p133_p5 = scmp.eq.s32.totalorder %s666_s28, 1 }
  0x12   : > { %p1387_p4 = por %p127_p2, %p126_p1  ;;  %s113_s7 = ssub.s32 %s1285_s26, %s1688_s29 }
  0x13   : > { %p667_p6 = scmp.ge.s32.totalorder %s1289_s0, 1  ;;  %p114_p7 = scmp.eq.s32.totalorder %s113_s7, 0 }
  0x14   : > { %p1394_p8 = por %p133_p5, %p132_p3  ;;  %p140_p9 = scmp.lt.s32.totalorder %s1289_s0, 3 }
  0x15   : > { %s1400_s9 = scalar_select %p114_p7, %s1277_s24, %s116_s30  }
  0x16   : > { %p141_p10 = pnand %p667_p6, %p140_p9  ;;  %p695_p11 = scmp.eq.s32.totalorder %s665_s27, 0 }
  0x17   : > { %s1666_s2 = sld [smem:[#allocation50_spill]]  ;;  %s1292_s13 = smov [#allocation6]  }
  0x18   : > { %p687_p12 = pneg %p141_p10  ;;  %s156_s14 = sshll.u32 %s1292_s13, 4  ;;  %s157_s14 = int_to_ptr.vmem [resolvable:$true] %s156_s14 }
  0x19   : > { %s1293_s15 = smov 128   ;;  %s1294_s16 = smov 8  }
  0x1a   : > { %p688_p13 = pnand %p695_p11, %p687_p12  ;;  %178 = sbr.rel (%p141_p10) target bundleno = 797 (0x31d), region = 32 }
  0x1d   : > { %s154_s12 = sshll.u32 %s1666_s2, 4  ;;  %s155_s12 = int_to_ptr.hbm [resolvable:$true] %s154_s12 }
  0x1e   : > { %690 = dma.hbm_to_vmem [thread:$0]  (!%p688_p13), %s155_s12, 256, %s157_s14, [#allocation7], %s1293_s15, %s1293_s15, %s1294_s16  }
  0x1f   : > { %1256 = dma.done.wait (%p695_p11), [#allocation7], 256  }
  0x20   : > { %1258 = vsyncadd (%p695_p11), [#allocation7], 4294967040  ;;  %s1656_s17 = sand.u32 1, %s1273_s23   ;;  %s1407_s18 = sshll.u32 %s1281_s25, 4 }
  0x21   : > { %s1411_s19 = sshll.u32 %s1656_s17, 4  ;;  %s205_s20 = sld [smem:[#allocation5 + %s1407_s18]] }
  0x22   : > { %s1295_s21 = smov [#allocation2]   ;;  %s220_s28 = sadd.s32 1, %s1407_s18 }
  0x23   : > { %s216_s27 = sshll.u32 %s1295_s21, 4  ;;  %s221_s30 = sld [smem:[#allocation5 + %s220_s28]]  ;;  %s217_s27 = int_to_ptr.vmem [resolvable:$true] %s216_s27 }
  0x24   : > { %s237_s7 = sadd.s32 2, %s1407_s18  ;;  %s1296_s10 = smov [#allocation2 + $0x1]  }
  0x25   : > { %s1416_s11 = sshll.u32 %s1296_s10, 4  ;;  %s238_s12 = sld [smem:[#allocation5 + %s237_s7]]  ;;  %s234_s11 = int_to_ptr.vmem [resolvable:$true] %s1416_s11 }
  0x26   : > { %s1667_s3 = sld [smem:[#allocation51_spill]]  ;;  %s1297_s10 = smov [#allocation2 + $0x2]  }
  0x27   : > { %s1668_s4 = sld [smem:[#allocation52_spill]]  ;;  %s206_s28 = scalar_lea.hbm %s1651_s1, %s205_s20 }
  0x28   : > { %s214_s17 = sshll.u32 %s206_s28, 4  ;;  %s1432_s2 = sshll.u32 %s1297_s10, 4  ;;  %s215_s17 = int_to_ptr.hbm [resolvable:$true] %s214_s17  ;;  %s251_s2 = int_to_ptr.vmem [resolvable:$true] %s1432_s2 }
  0x29   : > { %s817_s7 = sshra.s32 %s215_s17, 4  ;;  %s1437_s14 = scalar_lea.hbm %s1651_s1, 512  ;;  %s818_s7 = int_to_ptr.hbm [resolvable:$true] %s817_s7 }
  0x2a   : > { %s819_s25 = scalar_lea.hbm %s818_s7, 1  ;;  %p822_p1 = scmp.lt.s32.totalorder %s818_s7, %s1651_s1 }
  0x2b   : > { %p820_p0 = scmp.ne.s32.totalorder %s818_s7, %s819_s25  ;;  %p823_p2 = scmp.lt.s32.totalorder %s1437_s14, %s819_s25 }
  0x2c   : > { %v1421_v0 = vld [vmem:[%s1667_s3] sm:$0x1] }
  0x2d   : > { %v1426_v1 = vld [vmem:[%s1668_s4] sm:$0x1]  ;;  %p824_p3 = por %p823_p2, %p822_p1 }
  0x2f   : > { %p825_p5 = pnand %p824_p3, %p820_p0 }
  0x31   : > { %828 = shalt.err (!%p825_p5)  }
  0x32   : > { %219 = dma.hbm_to_vmem [thread:$0]  %s215_s17, 16, %s217_s27, [#allocation3] }
  0x33   : > { %s222_s21 = scalar_lea.hbm %s1651_s1, %s221_s30  ;;  %s239_s13 = scalar_lea.hbm %s1651_s1, %s238_s12 }
  0x34   : > { %s231_s3 = sshll.u32 %s222_s21, 4  ;;  %s248_s4 = sshll.u32 %s239_s13, 4  ;;  %s232_s3 = int_to_ptr.hbm [resolvable:$true] %s231_s3  ;;  %s249_s4 = int_to_ptr.hbm [resolvable:$true] %s248_s4 }
  0x35   : > { %s841_s7 = sshra.s32 %s232_s3, 4  ;;  %s842_s7 = int_to_ptr.hbm [resolvable:$true] %s841_s7 }
  0x36   : > { %s843_s25 = scalar_lea.hbm %s842_s7, 1  ;;  %p846_p7 = scmp.lt.s32.totalorder %s842_s7, %s1651_s1 }
  0x37   : > { %p844_p6 = scmp.ne.s32.totalorder %s842_s7, %s843_s25  ;;  %p847_p9 = scmp.lt.s32.totalorder %s1437_s14, %s843_s25 }
  0x39   : > { %p848_p10 = por %p847_p9, %p846_p7 }
  0x3b   : > { %p849_p11 = pnand %p848_p10, %p844_p6 }
  0x3d   : > { %852 = shalt.err (!%p849_p11)  }
  0x3e   : > { %236 = dma.hbm_to_vmem [thread:$0]  %s232_s3, 16, %s234_s11, [#allocation3] }
  0x3f   : > { %s254_s27 = sadd.s32 3, %s1407_s18  ;;  %s865_s30 = sshra.s32 %s249_s4, 4  ;;  %s866_s30 = int_to_ptr.hbm [resolvable:$true] %s865_s30 }
  0x40   : > { %s867_s12 = scalar_lea.hbm %s866_s30, 1  ;;  %p870_p13 = scmp.lt.s32.totalorder %s866_s30, %s1651_s1 }
  0x41   : > { %p868_p12 = scmp.ne.s32.totalorder %s866_s30, %s867_s12  ;;  %p871_p0 = scmp.lt.s32.totalorder %s1437_s14, %s867_s12 }
  0x43   : > { %p872_p1 = por %p871_p0, %p870_p13 }
  0x45   : > { %p873_p2 = pnand %p872_p1, %p868_p12 }
  0x47   : > { %876 = shalt.err (!%p873_p2)  }
  0x48   : > { %253 = dma.hbm_to_vmem [thread:$0]  %s249_s4, 16, %s251_s2, [#allocation3] }
  0x49   : > { %s255_s21 = sld [smem:[#allocation5 + %s254_s27]]  ;;  %s1298_s28 = smov [#allocation2 + $0x3]  }
  0x4a   : > { %s267_s11 = sshll.u32 %s1298_s28, 4  ;;  %s271_s3 = sadd.s32 4, %s1407_s18  ;;  %s268_s11 = int_to_ptr.vmem [resolvable:$true] %s267_s11 }
  0x4b   : > { %s272_s10 = sld [smem:[#allocation5 + %s271_s3]]  ;;  %s288_s13 = sadd.s32 5, %s1407_s18 }
  0x4c   : > { %s1299_s7 = smov [#allocation2 + $0x4]   ;;  %s289_s15 = sld [smem:[#allocation5 + %s288_s13]] }
  0x4d   : > { %s1463_s25 = sshll.u32 %s1299_s7, 4  ;;  %s1300_s4 = smov [#allocation2 + $0x5]  }
  0x4e   : > { %1669 = sst [smem:[#allocation49_spill]] %s1463_s25  ;;  %s1469_s12 = sshll.u32 %s1300_s4, 4  ;;  %s302_s12 = int_to_ptr.vmem [resolvable:$true] %s1469_s12 }
  0x4f   : > { %s256_s2 = scalar_lea.hbm %s1651_s1, %s255_s21 }
  0x50   : > { %s265_s27 = sshll.u32 %s256_s2, 4  ;;  %s266_s27 = int_to_ptr.hbm [resolvable:$true] %s265_s27 }
  0x51   : > { %s273_s28 = scalar_lea.hbm %s1651_s1, %s272_s10  ;;  %s889_s3 = sshra.s32 %s266_s27, 4  ;;  %s890_s3 = int_to_ptr.hbm [resolvable:$true] %s889_s3 }
  0x52   : > { %s891_s7 = scalar_lea.hbm %s890_s3, 1  ;;  %p894_p5 = scmp.lt.s32.totalorder %s890_s3, %s1651_s1 }
  0x53   : > { %p892_p3 = scmp.ne.s32.totalorder %s890_s3, %s891_s7  ;;  %p895_p6 = scmp.lt.s32.totalorder %s1437_s14, %s891_s7 }
  0x55   : > { %p896_p7 = por %p895_p6, %p894_p5 }
  0x57   : > { %p897_p9 = pnand %p896_p7, %p892_p3 }
  0x59   : > { %900 = shalt.err (!%p897_p9)  }
  0x5a   : > { %270 = dma.hbm_to_vmem [thread:$0]  %s266_s27, 16, %s268_s11, [#allocation3] }
  0x5b   : > { %s282_s21 = sshll.u32 %s273_s28, 4  ;;  %s290_s2 = scalar_lea.hbm %s1651_s1, %s289_s15  ;;  %s283_s21 = int_to_ptr.hbm [resolvable:$true] %s282_s21 }
  0x5c   : > { %s299_s10 = sshll.u32 %s290_s2, 4  ;;  %s913_s4 = sshra.s32 %s283_s21, 4  ;;  %s914_s4 = int_to_ptr.hbm [resolvable:$true] %s913_s4  ;;  %s300_s10 = int_to_ptr.hbm [resolvable:$true] %s299_s10 }
  0x5d   : > { %s915_s20 = scalar_lea.hbm %s914_s4, 1  ;;  %p918_p11 = scmp.lt.s32.totalorder %s914_s4, %s1651_s1 }
  0x5e   : > { %p916_p10 = scmp.ne.s32.totalorder %s914_s4, %s915_s20  ;;  %p919_p12 = scmp.lt.s32.totalorder %s1437_s14, %s915_s20 }
  0x60   : > { %p920_p13 = por %p919_p12, %p918_p11 }
  0x62   : > { %p921_p0 = pnand %p920_p13, %p916_p10 }
  0x64   : > { %924 = shalt.err (!%p921_p0)  }
  0x65   : > { %s1670_s11 = sld [smem:[#allocation49_spill]]  ;;  %s305_s15 = sadd.s32 6, %s1407_s18 }
  0x66   : > { %s937_s28 = sshra.s32 %s300_s10, 4  ;;  %s938_s28 = int_to_ptr.hbm [resolvable:$true] %s937_s28 }
  0x67   : > { %s939_s3 = scalar_lea.hbm %s938_s28, 1  ;;  %p942_p2 = scmp.lt.s32.totalorder %s938_s28, %s1651_s1 }
  0x68   : > { %p940_p1 = scmp.ne.s32.totalorder %s938_s28, %s939_s3  ;;  %p943_p3 = scmp.lt.s32.totalorder %s1437_s14, %s939_s3 }
  0x6a   : > { %p944_p5 = por %p943_p3, %p942_p2 }
  0x6b   : > { %s1671_s27 = int_to_ptr.vmem [resolvable:$true] %s1670_s11 }
  0x6c   : > { %287 = dma.hbm_to_vmem [thread:$0]  %s283_s21, 16, %s1671_s27, [#allocation3] }
  0x6d   : > { %p945_p6 = pnand %p944_p5, %p940_p1 }
  0x6f   : > { %948 = shalt.err (!%p945_p6)  }
  0x70   : > { %304 = dma.hbm_to_vmem [thread:$0]  %s300_s10, 16, %s302_s12, [#allocation3] }
  0x71   : > { %s306_s21 = sld [smem:[#allocation5 + %s305_s15]]  ;;  %s1301_s17 = smov [#allocation2 + $0x6]  }
  0x72   : > { %s318_s30 = sshll.u32 %s1301_s17, 4  ;;  %s322_s2 = sadd.s32 7, %s1407_s18  ;;  %s319_s30 = int_to_ptr.vmem [resolvable:$true] %s318_s30 }
  0x73   : > { %s323_s4 = sld [smem:[#allocation5 + %s322_s2]]  ;;  %s339_s20 = sadd.s32 8, %s1407_s18 }
  0x74   : > { %s1302_s16 = smov [#allocation2 + $0x7]   ;;  %s340_s11 = sld [smem:[#allocation5 + %s339_s20]] }
  0x75   : > { %s1497_s25 = sshll.u32 %s1302_s16, 4  ;;  %s1303_s7 = smov [#allocation2 + $0x8]  }
  0x76   : > { %1672 = sst [smem:[#allocation49_spill]] %s1497_s25  ;;  %s1503_s12 = sshll.u32 %s1303_s7, 4  ;;  %s354_s12 = int_to_ptr.vmem [resolvable:$true] %s1503_s12 }
  0x77   : > { %s307_s3 = scalar_lea.hbm %s1651_s1, %s306_s21 }
  0x78   : > { %s316_s10 = sshll.u32 %s307_s3, 4  ;;  %s317_s10 = int_to_ptr.hbm [resolvable:$true] %s316_s10 }
  0x79   : > { %s324_s17 = scalar_lea.hbm %s1651_s1, %s323_s4  ;;  %s961_s2 = sshra.s32 %s317_s10, 4  ;;  %s962_s2 = int_to_ptr.hbm [resolvable:$true] %s961_s2 }
  0x7a   : > { %s963_s16 = scalar_lea.hbm %s962_s2, 1  ;;  %p966_p9 = scmp.lt.s32.totalorder %s962_s2, %s1651_s1 }
  0x7b   : > { %p964_p7 = scmp.ne.s32.totalorder %s962_s2, %s963_s16  ;;  %p967_p10 = scmp.lt.s32.totalorder %s1437_s14, %s963_s16 }
  0x7d   : > { %p968_p11 = por %p967_p10, %p966_p9 }
  0x7f   : > { %p969_p12 = pnand %p968_p11, %p964_p7 }
  0x81   : > { %972 = shalt.err (!%p969_p12)  }
  0x82   : > { %321 = dma.hbm_to_vmem [thread:$0]  %s317_s10, 16, %s319_s30, [#allocation3] }
  0x83   : > { %s333_s21 = sshll.u32 %s324_s17, 4  ;;  %s341_s3 = scalar_lea.hbm %s1651_s1, %s340_s11  ;;  %s334_s21 = int_to_ptr.hbm [resolvable:$true] %s333_s21 }
  0x84   : > { %s351_s4 = sshll.u32 %s341_s3, 4  ;;  %s985_s7 = sshra.s32 %s334_s21, 4  ;;  %s986_s7 = int_to_ptr.hbm [resolvable:$true] %s985_s7  ;;  %s352_s4 = int_to_ptr.hbm [resolvable:$true] %s351_s4 }
  0x85   : > { %s987_s15 = scalar_lea.hbm %s986_s7, 1  ;;  %p990_p0 = scmp.lt.s32.totalorder %s986_s7, %s1651_s1 }
  0x86   : > { %p988_p13 = scmp.ne.s32.totalorder %s986_s7, %s987_s15  ;;  %p991_p1 = scmp.lt.s32.totalorder %s1437_s14, %s987_s15 }
  0x88   : > { %p992_p2 = por %p991_p1, %p990_p0 }
  0x8a   : > { %p993_p3 = pnand %p992_p2, %p988_p13 }
  0x8c   : > { %996 = shalt.err (!%p993_p3)  }
  0x8d   : > { %s1673_s30 = sld [smem:[#allocation49_spill]]  ;;  %s357_s11 = sadd.s32 9, %s1407_s18 }
  0x8e   : > { %s1009_s17 = sshra.s32 %s352_s4, 4  ;;  %s1010_s17 = int_to_ptr.hbm [resolvable:$true] %s1009_s17 }
  0x8f   : > { %s1011_s2 = scalar_lea.hbm %s1010_s17, 1  ;;  %p1014_p6 = scmp.lt.s32.totalorder %s1010_s17, %s1651_s1 }
  0x90   : > { %p1012_p5 = scmp.ne.s32.totalorder %s1010_s17, %s1011_s2  ;;  %p1015_p7 = scmp.lt.s32.totalorder %s1437_s14, %s1011_s2 }
  0x92   : > { %p1016_p9 = por %p1015_p7, %p1014_p6 }
  0x93   : > { %s1674_s10 = int_to_ptr.vmem [resolvable:$true] %s1673_s30 }
  0x94   : > { %338 = dma.hbm_to_vmem [thread:$0]  %s334_s21, 16, %s1674_s10, [#allocation3] }
  0x95   : > { %p1017_p10 = pnand %p1016_p9, %p1012_p5 }
  0x97   : > { %1020 = shalt.err (!%p1017_p10)  }
  0x98   : > { %356 = dma.hbm_to_vmem [thread:$0]  %s352_s4, 16, %s354_s12, [#allocation3 + $0x1] }
  0x99   : > { %s358_s21 = sld [smem:[#allocation5 + %s357_s11]]  ;;  %s1304_s27 = smov [#allocation2 + $0x9]  }
  0x9a   : > { %s370_s28 = sshll.u32 %s1304_s27, 4  ;;  %s374_s3 = sadd.s32 10, %s1407_s18  ;;  %s371_s28 = int_to_ptr.vmem [resolvable:$true] %s370_s28 }
  0x9b   : > { %s375_s7 = sld [smem:[#allocation5 + %s374_s3]]  ;;  %s391_s15 = sadd.s32 11, %s1407_s18 }
  0x9c   : > { %s1305_s13 = smov [#allocation2 + $0xa]   ;;  %s392_s30 = sld [smem:[#allocation5 + %s391_s15]] }
  0x9d   : > { %s1531_s25 = sshll.u32 %s1305_s13, 4  ;;  %s1306_s16 = smov [#allocation2 + $0xb]  }
  0x9e   : > { %1675 = sst [smem:[#allocation49_spill]] %s1531_s25  ;;  %s1537_s12 = sshll.u32 %s1306_s16, 4  ;;  %s405_s12 = int_to_ptr.vmem [resolvable:$true] %s1537_s12 }
  0x9f   : > { %s359_s2 = scalar_lea.hbm %s1651_s1, %s358_s21 }
  0xa0   : > { %s368_s4 = sshll.u32 %s359_s2, 4  ;;  %s369_s4 = int_to_ptr.hbm [resolvable:$true] %s368_s4 }
  0xa1   : > { %s376_s27 = scalar_lea.hbm %s1651_s1, %s375_s7  ;;  %s1033_s3 = sshra.s32 %s369_s4, 4  ;;  %s1034_s3 = int_to_ptr.hbm [resolvable:$true] %s1033_s3 }
  0xa2   : > { %s1035_s13 = scalar_lea.hbm %s1034_s3, 1  ;;  %p1038_p12 = scmp.lt.s32.totalorder %s1034_s3, %s1651_s1 }
  0xa3   : > { %p1036_p11 = scmp.ne.s32.totalorder %s1034_s3, %s1035_s13  ;;  %p1039_p13 = scmp.lt.s32.totalorder %s1437_s14, %s1035_s13 }
  0xa5   : > { %p1040_p0 = por %p1039_p13, %p1038_p12 }
  0xa7   : > { %p1041_p1 = pnand %p1040_p0, %p1036_p11 }
  0xa9   : > { %1044 = shalt.err (!%p1041_p1)  }
  0xaa   : > { %373 = dma.hbm_to_vmem [thread:$0]  %s369_s4, 16, %s371_s28, [#allocation3 + $0x1] }
  0xab   : > { %s385_s21 = sshll.u32 %s376_s27, 4  ;;  %s393_s2 = scalar_lea.hbm %s1651_s1, %s392_s30  ;;  %s386_s21 = int_to_ptr.hbm [resolvable:$true] %s385_s21 }
  0xac   : > { %s402_s7 = sshll.u32 %s393_s2, 4  ;;  %s1057_s16 = sshra.s32 %s386_s21, 4  ;;  %s1058_s16 = int_to_ptr.hbm [resolvable:$true] %s1057_s16  ;;  %s403_s7 = int_to_ptr.hbm [resolvable:$true] %s402_s7 }
  0xad   : > { %s1059_s11 = scalar_lea.hbm %s1058_s16, 1  ;;  %p1062_p3 = scmp.lt.s32.totalorder %s1058_s16, %s1651_s1 }
  0xae   : > { %p1060_p2 = scmp.ne.s32.totalorder %s1058_s16, %s1059_s11  ;;  %p1063_p5 = scmp.lt.s32.totalorder %s1437_s14, %s1059_s11 }
  0xb0   : > { %p1064_p6 = por %p1063_p5, %p1062_p3 }
  0xb2   : > { %p1065_p7 = pnand %p1064_p6, %p1060_p2 }
  0xb4   : > { %1068 = shalt.err (!%p1065_p7)  }
  0xb5   : > { %s1676_s28 = sld [smem:[#allocation49_spill]]  ;;  %s408_s30 = sadd.s32 12, %s1407_s18 }
  0xb6   : > { %s1081_s27 = sshra.s32 %s403_s7, 4  ;;  %s1082_s27 = int_to_ptr.hbm [resolvable:$true] %s1081_s27 }
  0xb7   : > { %s1083_s3 = scalar_lea.hbm %s1082_s27, 1  ;;  %p1086_p10 = scmp.lt.s32.totalorder %s1082_s27, %s1651_s1 }
  0xb8   : > { %p1084_p9 = scmp.ne.s32.totalorder %s1082_s27, %s1083_s3  ;;  %p1087_p11 = scmp.lt.s32.totalorder %s1437_s14, %s1083_s3 }
  0xba   : > { %p1088_p12 = por %p1087_p11, %p1086_p10 }
  0xbb   : > { %s1677_s4 = int_to_ptr.vmem [resolvable:$true] %s1676_s28 }
  0xbc   : > { %390 = dma.hbm_to_vmem [thread:$0]  %s386_s21, 16, %s1677_s4, [#allocation3 + $0x1] }
  0xbd   : > { %p1089_p13 = pnand %p1088_p12, %p1084_p9 }
  0xbf   : > { %1092 = shalt.err (!%p1089_p13)  }
  0xc0   : > { %407 = dma.hbm_to_vmem [thread:$0]  %s403_s7, 16, %s405_s12, [#allocation3 + $0x1] }
  0xc1   : > { %s409_s21 = sld [smem:[#allocation5 + %s408_s30]]  ;;  %s1307_s10 = smov [#allocation2 + $0xc]  }
  0xc2   : > { %s421_s17 = sshll.u32 %s1307_s10, 4  ;;  %s425_s2 = sadd.s32 13, %s1407_s18  ;;  %s422_s17 = int_to_ptr.vmem [resolvable:$true] %s421_s17 }
  0xc3   : > { %s426_s16 = sld [smem:[#allocation5 + %s425_s2]]  ;;  %s442_s11 = sadd.s32 14, %s1407_s18 }
  0xc4   : > { %s1308_s20 = smov [#allocation2 + $0xd]   ;;  %s443_s28 = sld [smem:[#allocation5 + %s442_s11]] }
  0xc5   : > { %s1565_s25 = sshll.u32 %s1308_s20, 4  ;;  %s1309_s13 = smov [#allocation2 + $0xe]  }
  0xc6   : > { %1678 = sst [smem:[#allocation49_spill]] %s1565_s25  ;;  %s1571_s12 = sshll.u32 %s1309_s13, 4  ;;  %s456_s12 = int_to_ptr.vmem [resolvable:$true] %s1571_s12 }
  0xc7   : > { %s410_s3 = scalar_lea.hbm %s1651_s1, %s409_s21 }
  0xc8   : > { %s419_s7 = sshll.u32 %s410_s3, 4  ;;  %s420_s7 = int_to_ptr.hbm [resolvable:$true] %s419_s7 }
  0xc9   : > { %s427_s10 = scalar_lea.hbm %s1651_s1, %s426_s16  ;;  %s1105_s2 = sshra.s32 %s420_s7, 4  ;;  %s1106_s2 = int_to_ptr.hbm [resolvable:$true] %s1105_s2 }
  0xca   : > { %s1107_s20 = scalar_lea.hbm %s1106_s2, 1  ;;  %p1110_p1 = scmp.lt.s32.totalorder %s1106_s2, %s1651_s1 }
  0xcb   : > { %p1108_p0 = scmp.ne.s32.totalorder %s1106_s2, %s1107_s20  ;;  %p1111_p2 = scmp.lt.s32.totalorder %s1437_s14, %s1107_s20 }
  0xcd   : > { %p1112_p3 = por %p1111_p2, %p1110_p1 }
  0xcf   : > { %p1113_p5 = pnand %p1112_p3, %p1108_p0 }
  0xd1   : > { %1116 = shalt.err (!%p1113_p5)  }
  0xd2   : > { %424 = dma.hbm_to_vmem [thread:$0]  %s420_s7, 16, %s422_s17, [#allocation3 + $0x1] }
  0xd3   : > { %s436_s21 = sshll.u32 %s427_s10, 4  ;;  %s444_s3 = scalar_lea.hbm %s1651_s1, %s443_s28  ;;  %s437_s21 = int_to_ptr.hbm [resolvable:$true] %s436_s21 }
  0xd4   : > { %s453_s16 = sshll.u32 %s444_s3, 4  ;;  %s1129_s13 = sshra.s32 %s437_s21, 4  ;;  %s1130_s13 = int_to_ptr.hbm [resolvable:$true] %s1129_s13  ;;  %s454_s16 = int_to_ptr.hbm [resolvable:$true] %s453_s16 }
  0xd5   : > { %s1131_s30 = scalar_lea.hbm %s1130_s13, 1  ;;  %p1134_p7 = scmp.lt.s32.totalorder %s1130_s13, %s1651_s1 }
  0xd6   : > { %p1132_p6 = scmp.ne.s32.totalorder %s1130_s13, %s1131_s30  ;;  %p1135_p9 = scmp.lt.s32.totalorder %s1437_s14, %s1131_s30 }
  0xd8   : > { %p1136_p10 = por %p1135_p9, %p1134_p7 }
  0xda   : > { %p1137_p11 = pnand %p1136_p10, %p1132_p6 }
  0xdc   : > { %1140 = shalt.err (!%p1137_p11)  }
  0xdd   : > { %s1679_s17 = sld [smem:[#allocation49_spill]]  ;;  %s459_s28 = sadd.s32 15, %s1407_s18 }
  0xde   : > { %s1153_s10 = sshra.s32 %s454_s16, 4  ;;  %s1154_s10 = int_to_ptr.hbm [resolvable:$true] %s1153_s10 }
  0xdf   : > { %s1155_s2 = scalar_lea.hbm %s1154_s10, 1  ;;  %p1158_p13 = scmp.lt.s32.totalorder %s1154_s10, %s1651_s1 }
  0xe0   : > { %p1156_p12 = scmp.ne.s32.totalorder %s1154_s10, %s1155_s2  ;;  %p1159_p0 = scmp.lt.s32.totalorder %s1437_s14, %s1155_s2 }
  0xe2   : > { %p1160_p1 = por %p1159_p0, %p1158_p13 }
  0xe3   : > { %s1680_s7 = int_to_ptr.vmem [resolvable:$true] %s1679_s17 }
  0xe4   : > { %441 = dma.hbm_to_vmem [thread:$0]  %s437_s21, 16, %s1680_s7, [#allocation3 + $0x1] }
  0xe5   : > { %p1161_p2 = pnand %p1160_p1, %p1156_p12 }
  0xe7   : > { %1164 = shalt.err (!%p1161_p2)  }
  0xe8   : > { %458 = dma.hbm_to_vmem [thread:$0]  %s454_s16, 16, %s456_s12, [#allocation3 + $0x1] }
  0xe9   : > { %s460_s4 = sld [smem:[#allocation5 + %s459_s28]]  ;;  %s1310_s21 = smov [#allocation2 + $0xf]  }
  0xea   : > { %s472_s27 = sshll.u32 %s1310_s21, 4  ;;  %s473_s27 = int_to_ptr.vmem [resolvable:$true] %s472_s27 }
  0xef   : > { %s461_s30 = scalar_lea.hbm %s1651_s1, %s460_s4 }
  0xf0   : > { %s470_s15 = sshll.u32 %s461_s30, 4  ;;  %s471_s15 = int_to_ptr.hbm [resolvable:$true] %s470_s15 }
  0xf1   : > { %s1177_s25 = sshra.s32 %s471_s15, 4  ;;  %s1178_s25 = int_to_ptr.hbm [resolvable:$true] %s1177_s25 }
  0xf2   : > { %s1179_s17 = scalar_lea.hbm %s1178_s25, 1  ;;  %p1182_p5 = scmp.lt.s32.totalorder %s1178_s25, %s1651_s1 }
  0xf3   : > { %p1180_p3 = scmp.ne.s32.totalorder %s1178_s25, %s1179_s17  ;;  %p1183_p6 = scmp.lt.s32.totalorder %s1437_s14, %s1179_s17 }
  0xf5   : > { %p1184_p7 = por %p1183_p6, %p1182_p5 }
  0xf7   : > { %p1185_p9 = pnand %p1184_p7, %p1180_p3 }
  0xf9   : > { %1188 = shalt.err (!%p1185_p9)  }
  0xfa   : > { %475 = dma.hbm_to_vmem [thread:$0]  %s471_s15, 16, %s473_s27, [#allocation3 + $0x1] }
  0xfb   : > { %s1605_s12 = scalar_lea.vmem [#allocation9], %s1411_s19 }
  0xfc   : > { %1259 = dma.done.wait [#allocation3], 128 }
  0xfd   : > { %1260 = vsyncadd [#allocation3], 4294967168  ;;  %v479_v2 = vld [vmem:[#allocation2] sm:$0xff]  ;;  %v480_v3 = vld [vmem:[#allocation6] sm:$0xff]  ;;  %v1311_v5 = vmov 128.0   ;;  %v510_v25 = vperm.slane %v1421_v0, 0 }
  0xfe   : > { %v481_v4 = vadd.f32 %v480_v3, %v479_v2  ;;  %769 = vrcp.f32 %v1311_v5  ;;  %v514_v27 = vperm.slane %v1426_v1, 0 }
 0x100   : > { %482 = vadd.xlane.f32.xlu0 %v481_v4 }
 0x104   : > { %v770_v6 = vpop.eup %769 }
 0x105   : > { %v485_v7 = vmul.f32 128.0, %v770_v6  ;;  %vm489_vm0 = vweird.f32 %v770_v6 }
 0x107   : > { %v486_v8 = vsub.f32 1.0, %v485_v7 }
 0x109   : > { %v487_v9 = vmul.f32 %v770_v6, %v486_v8 }
 0x10b   : > { %v488_v10 = vadd.f32 %v770_v6, %v487_v9 }
 0x10d   : > { %v490_v11 = vsel %vm489_vm0, %v770_v6, %v488_v10 }
 0x173   : > { %v483_v12 = vpop.xlane.xlu0 %482 }
 0x174   : > { %v491_v13 = vmul.f32 %v490_v11, %v483_v12 }
 0x176   : > { %v492_v14 = vsub.f32 %v481_v4, %v491_v13 }
 0x178   : > { %v493_v15 = vmul.f32 %v492_v14, %v492_v14 }
 0x17a   : > { %494 = vadd.xlane.f32.xlu0 %v493_v15 }
 0x1ed   : > { %v495_v16 = vpop.xlane.xlu0 %494 }
 0x1ee   : > { %v496_v17 = vmul.f32 %v495_v16, %v490_v11 }
 0x1f0   : > { %v497_v18 = vadd.f32 1e-12, %v496_v17 }
 0x1f2   : > { %771 = vrsqrt.f32 %v497_v18  ;;  %vm504_vm2 = vweird.f32 %v497_v18 }
 0x1f8   : > { %v772_v19 = vpop.eup %771 }
 0x1f9   : > { %v499_v20 = vmul.f32 %v772_v19, %v497_v18  ;;  %vm505_vm1 = vweird.f32 %v772_v19 }
 0x1fa   : > { %vm506_vm3 = vmor %vm504_vm2, %vm505_vm1 }
 0x1fb   : > { %v500_v21 = vmul.f32 %v772_v19, %v499_v20 }
 0x1fd   : > { %v501_v22 = vmul.f32 0.5, %v500_v21 }
 0x1ff   : > { %v502_v23 = vsub.f32 1.5, %v501_v22 }
 0x201   : > { %v503_v24 = vmul.f32 %v772_v19, %v502_v23 }
 0x203   : > { %v507_v26 = vsel %vm506_vm3, %v772_v19, %v503_v24 }
 0x204   : > { %v508_v28 = vmul.f32 %v507_v26, %v492_v14 }
 0x206   : > { %v512_v29 = vmul.f32 %v510_v25, %v508_v28 }
 0x208   : > { %v516_v30 = vadd.f32 %v514_v27, %v512_v29 }
 0x20a   : > { %517 = vst [vmem:[%s1605_s12] sm:$0xff] %v516_v30 }
 0x20b   : > { %1261 = dma.done.wait [#allocation3 + $0x1], 128 }
 0x20c   : > { %1262 = vsyncadd [#allocation3 + $0x1], 4294967168  ;;  %v520_v31 = vld [vmem:[#allocation2 + $0x8] sm:$0xff]  ;;  %v521_v32 = vld [vmem:[#allocation6 + $0x8] sm:$0xff]  ;;  %s559_s16 = scalar_lea.hbm %s1655_s5, %s1407_s18  ;;  %s560_s28 = sshll.u32 %s1605_s12, 4  ;;  %s561_s28 = int_to_ptr.vmem [resolvable:$true] %s560_s28 }
 0x20d   : > { %v522_v33 = vadd.f32 %v521_v32, %v520_v31  ;;  %s562_s2 = sshll.u32 %s559_s16, 4  ;;  %s1681_s20 = sand.u32 1, %s1273_s23   ;;  %s563_s2 = int_to_ptr.hbm [resolvable:$true] %s562_s2 }
 0x20e   : > { %s547_s11 = scalar_lea.sflag [#allocation8], %s1681_s20  ;;  %s1215_s4 = sshra.s32 %s563_s2, 4  ;;  %s1216_s4 = int_to_ptr.hbm [resolvable:$true] %s1215_s4 }
 0x20f   : > { %523 = vadd.xlane.f32.xlu0 %v522_v33  ;;  %s1217_s21 = scalar_lea.hbm %s1216_s4, 16  ;;  %s1221_s3 = scalar_lea.hbm %s1655_s5, 32 }
 0x210   : > { %p1218_p10 = scmp.ne.s32.totalorder %s1216_s4, %s1217_s21  ;;  %p1222_p13 = scmp.lt.s32.totalorder %s1216_s4, %s1655_s5 }
 0x211   : > { %p1223_p0 = scmp.lt.s32.totalorder %s1221_s3, %s1217_s21 }
 0x212   : > { %p1219_p11 = pnand %p1218_p10, %p1387_p4 }
 0x213   : > { %p1224_p1 = por %p1223_p0, %p1222_p13 }
 0x214   : > { %p1220_p12 = pneg %p1219_p11 }
 0x216   : > { %p1225_p2 = pnand %p1224_p1, %p1220_p12 }
 0x282   : > { %v524_v34 = vpop.xlane.xlu0 %523 }
 0x283   : > { %v525_v35 = vmul.f32 %v524_v34, %v490_v11 }
 0x285   : > { %v526_v36 = vsub.f32 %v522_v33, %v525_v35 }
 0x287   : > { %v527_v37 = vmul.f32 %v526_v36, %v526_v36 }
 0x289   : > { %528 = vadd.xlane.f32.xlu0 %v527_v37 }
 0x2fc   : > { %v529_v38 = vpop.xlane.xlu0 %528 }
 0x2fd   : > { %v530_v39 = vmul.f32 %v529_v38, %v490_v11 }
 0x2ff   : > { %v531_v40 = vadd.f32 1e-12, %v530_v39 }
 0x301   : > { %773 = vrsqrt.f32 %v531_v40  ;;  %vm538_vm5 = vweird.f32 %v531_v40 }
 0x307   : > { %v774_v41 = vpop.eup %773 }
 0x308   : > { %v533_v42 = vmul.f32 %v774_v41, %v531_v40  ;;  %vm539_vm4 = vweird.f32 %v774_v41 }
 0x309   : > { %vm540_vm6 = vmor %vm538_vm5, %vm539_vm4 }
 0x30a   : > { %v534_v43 = vmul.f32 %v774_v41, %v533_v42 }
 0x30c   : > { %v535_v44 = vmul.f32 0.5, %v534_v43 }
 0x30e   : > { %v536_v45 = vsub.f32 1.5, %v535_v44 }
 0x310   : > { %v537_v46 = vmul.f32 %v774_v41, %v536_v45 }
 0x312   : > { %v541_v47 = vsel %vm540_vm6, %v774_v41, %v537_v46 }
 0x313   : > { %v542_v48 = vmul.f32 %v541_v47, %v526_v36 }
 0x315   : > { %v543_v49 = vmul.f32 %v542_v48, %v510_v25 }
 0x317   : > { %v544_v50 = vadd.f32 %v543_v49, %v514_v27 }
 0x319   : > { %545 = vst [vmem:[%s1605_s12 + $0x8] sm:$0xff] %v544_v50 }
 0x31a   : > { %1228 = shalt.err (!%p1225_p2)
}
 0x31b   : > { %s1312_s15 = smov 128   ;;  %s1313_s25 = smov 8  }
 0x31c   : > { %685 = dma.vmem_to_hbm [thread:$0]  (%p1387_p4), %s561_s28, 256, %s563_s2, %s547_s11, %s1312_s15, %s1312_s15, %s1313_s25  }
 0x31d PF: > { %p697_p3 = scmp.ge.s32.totalorder %s1289_s0, 2  ;;  %s577_s17 = sand.u32 1, %s1269_s22  }
 0x31e   : > { %s578_s7 = scalar_lea.sflag [#allocation8], %s577_s17 }
 0x31f   : > { %p692_p5 = pnand %p697_p3, %p1394_p8 }
 0x321   : > { %p693_p6 = pneg %p692_p5 }
 0x323   : > { %1264 = dma.done.wait (%p693_p6), %s578_s7, 256  }
 0x324   : > { %1266 = vsyncadd (%p693_p6), %s578_s7, 4294967040  ;;  %s27_s0 = sadd.s32 1, %s1289_s0   ;;  %s1682_s22 = smov %s1273_s23 }
 0x325   : > { %p24_p7 = scmp.ge.s32.totalorder %s27_s0, 4   ;;  %s1683_s23 = smov %s1277_s24 }
 0x326   : > { %s1684_s24 = smov %s1400_s9  ;;  %s1685_s25 = smov %s1285_s26 }
 0x327   : > { %s1686_s26 = smov %s1688_s29  ;;  %26 = sbr.rel (!%p24_p7) target bundleno = 13 (0xd), region = 167 }
 0x32c   :  { %584 = vsyncpa [#allocation7], 1 }
 0x32d   :  { %586 = vsyncpa [#allocation7 + $0x1], 1 }
 0x32e   :  { %587 = vsyncpa [#allocation8], 1 }
 0x32f   :  { %589 = vsyncpa [#allocation8 + $0x1], 1 }
 0x330   :  { %590 = vsyncmov [#allocation3] }
 0x333   :  { %s591_s6 = vpop.sfrf %590 }
 0x334   :  { %p678_p4 = scmp.ne.s32.totalorder %s591_s6, 0 }
 0x336   :  { %595 = shalt.err (%p678_p4)  }
 0x337   :  { %597 = vsyncmov [#allocation3 + $0x1] }
 0x33a   :  { %s598_s8 = vpop.sfrf %597 }
 0x33b   :  { %p679_p8 = scmp.ne.s32.totalorder %s598_s8, 0 }
 0x33d   :  { %602 = shalt.err (%p679_p8)  }

</bundles_post_ra>
